<compile_context>
chip_gen: v7x
topology: tpu7x:2x2x1
jax: 0.10.0
libtpu: 0.0.40
codegen_flags: <defaults>
</compile_context>

<pallas_src>
import functools

import numpy as np
import jax
import jax.numpy as jnp
from jax import lax
from jax.experimental import pallas as pl
from jax.experimental.pallas import tpu as pltpu

NUM_HEADS = 4


def cnnmha_kernel(xt_ref, w1_ref, b1_ref, win_ref, bin_ref,
                  g_ref, gt_ref, wof_ref, bof_ref, wfc2_ref, bfc2_ref,
                  out_ref):
    f32 = jnp.float32
    BL = xt_ref.shape[0]
    E = w1_ref.shape[1]            # 16 (conv1 out channels == embed dim)
    NH = g_ref.shape[1]            # 4 heads
    B = out_ref.shape[0]
    L = BL // B

    # ---- conv1 (in_ch=1, k=3, pad=1) + ReLU as one im2col matmul ----
    xt = xt_ref[...]                                           # (B*L, 3)
    h1_flat = jnp.maximum(
        jnp.dot(xt, w1_ref[...], preferred_element_type=f32) + b1_ref[...],
        0.0)                                                   # (B*L, E)

    # ---- Q/K/V in ONE matmul; 1/sqrt(hd) already folded into Q cols ----
    qkv = jnp.dot(h1_flat, win_ref[...],
                  preferred_element_type=f32) + bin_ref[...]   # (B*L, 3E)
    qkv = qkv.reshape(B, L, 3 * E)
    q_last = qkv[:, L - 1, :E]                                 # (B, E)  (only last pos queried)
    k_all = qkv[:, :, E:2 * E]                                 # (B, L, E)
    v_all = qkv[:, :, 2 * E:]                                  # (B, L, E)

    # scores[b, l, h] = sum_{e in head h} q_last[b, e] * k[b, l, e]
    prod = q_last[:, None, :] * k_all                          # (B, L, E)
    scores = jnp.dot(prod.reshape(BL, E), g_ref[...],
                     preferred_element_type=f32).reshape(B, L, NH)

    # softmax over the sequence axis (axis=1), per batch & head
    m = jnp.max(scores, axis=1, keepdims=True)
    p = jnp.exp(scores - m)
    denom = jnp.sum(p, axis=1, keepdims=True)
    p = p * pl.reciprocal(denom, approx=False)                 # (B, L, NH)

    # ctx[b, e] = sum_l p[b, l, e // hd] * v[b, l, e]
    p_exp = jnp.dot(p.reshape(BL, NH), gt_ref[...],
                    preferred_element_type=f32).reshape(B, L, E)
    ctx = jnp.sum(p_exp * v_all, axis=1)                       # (B, E)

    # ---- (out_proj ∘ fc1) fused + ReLU -> fc2 ----
    h3 = jnp.maximum(
        jnp.dot(ctx, wof_ref[...], preferred_element_type=f32) + bof_ref[...],
        0.0)                                                   # (B, H)
    out_ref[...] = jnp.dot(h3, wfc2_ref[...],
                           preferred_element_type=f32) + bfc2_ref[...]  # (B, OP)


def pack_params(params, num_heads=NUM_HEADS):
    """One-time repack of PyTorch-layout params into kernel layout (outside hot path)."""
    (w1, b1, w_in, b_in, w_out, b_out, wfc1, bfc1, wfc2, bfc2) = params
    E = w1.shape[0]                 # 16
    H = wfc1.shape[0]
    O = wfc2.shape[0]
    OP = ((O + 127) // 128) * 128   # lane-dense padded output width
    HD = E // num_heads
    scale = np.float32(1.0 / np.sqrt(HD))

    w1r = jnp.transpose(w1[:, 0, :], (1, 0)).astype(jnp.float32)      # (3, E)
    b1r = jnp.asarray(b1, jnp.float32).reshape(1, E)

    winr = jnp.asarray(w_in.T, jnp.float32)                           # (E, 3E)
    winr = winr.at[:, :E].multiply(scale)                             # fold scale into Q cols
    binr = jnp.asarray(b_in, jnp.float32).reshape(1, 3 * E)
    binr = binr.at[:, :E].multiply(scale)

    # head group-sum matrices: G[e, h] = 1 iff e // HD == h ; GT = G.T
    G = np.zeros((E, num_heads), np.float32)
    for e in range(E):
        G[e, e // HD] = 1.0
    Gj = jnp.asarray(G)
    GTj = jnp.asarray(G.T)

    # fuse out_proj into fc1: relu(ctx @ W_of + b_of)
    W_of = jnp.asarray(w_out.T @ wfc1.T, jnp.float32)                 # (E, H)
    b_of = jnp.asarray(b_out @ wfc1.T + bfc1, jnp.float32).reshape(1, H)

    wfc2r = jnp.zeros((H, OP), jnp.float32).at[:, :O].set(wfc2.T)
    bfc2r = jnp.zeros((1, OP), jnp.float32).at[:, :O].set(bfc2)

    packed = (w1r, b1r, winr, binr, Gj, GTj, W_of, b_of, wfc2r, bfc2r)
    return packed, O


@functools.partial(jax.jit, static_argnames=("out_size",))
def cnnmha_forward(x, packed, out_size):
    """x: (B, L) float32.  packed: output of pack_params."""
    (w1r, b1r, winr, binr, Gj, GTj, W_of, b_of, wfc2r, bfc2r) = packed
    B, L = x.shape
    OP = wfc2r.shape[1]

    # im2col for the 3-tap conv (fuses with the pad in XLA)
    xp = jnp.pad(x.astype(jnp.float32), ((0, 0), (1, 1)))             # (B, L+2)
    xtaps = jnp.stack([xp[:, 0:L], xp[:, 1:L + 1], xp[:, 2:L + 2]],
                      axis=-1).reshape(B * L, 3)                      # (B*L, 3)

    vm = pl.BlockSpec(memory_space=pltpu.MemorySpace.VMEM)
    out_padded = pl.pallas_call(
        cnnmha_kernel,
        out_shape=jax.ShapeDtypeStruct((B, OP), jnp.float32),
        in_specs=[vm] * 11,
        out_specs=vm,
    )(xtaps, w1r, b1r, winr, binr, Gj, GTj, W_of, b_of, wfc2r, bfc2r)
    return out_padded[:, :out_size]


def torch_reference(x, params, num_heads=NUM_HEADS):
    """Pure-JAX replica of the PyTorch CNNMHA forward."""
    (w1, b1, w_in, b_in, w_out, b_out, wfc1, bfc1, wfc2, bfc2) = params
    B, L = x.shape
    E = w1.shape[0]
    hd = E // num_heads
    dn = ('NCH', 'OIH', 'NCH')
    h = x[:, None, :]                                            # (B, 1, L)
    h = jax.nn.relu(lax.conv_general_dilated(h, w1, (1,), [(1, 1)],
                                             dimension_numbers=dn)
                    + b1[None, :, None])                         # (B, E, L)
    xs = jnp.transpose(h, (2, 0, 1))                             # (L, B, E)
    qkv = xs @ w_in.T + b_in                                     # (L, B, 3E)
    q, k, v = qkv[..., :E], qkv[..., E:2 * E], qkv[..., 2 * E:]

    def split(t):                                                # -> (B*nh, L, hd)
        return jnp.transpose(t.reshape(L, B * num_heads, hd), (1, 0, 2))

    q, k, v = split(q), split(k), split(v)
    scores = jnp.einsum('nld,nmd->nlm', q, k) / np.sqrt(hd)
    p = jax.nn.softmax(scores, axis=-1)
    o = jnp.einsum('nlm,nmd->nld', p, v)                         # (B*nh, L, hd)
    o = jnp.transpose(o, (1, 0, 2)).reshape(L, B, E)             # (L, B, E)
    attn = o @ w_out.T + b_out                                   # (L, B, E)
    attn = jnp.transpose(attn, (1, 0, 2))                        # (B, L, E)
    last = attn[:, -1, :]                                        # (B, E)
    h3 = jax.nn.relu(last @ wfc1.T + bfc1)
    return h3 @ wfc2.T + bfc2


if __name__ == "__main__":
    B, L, H, O = 2, 16, 32, 4          # input_size=16, hidden_size=32, output_size=4
    E = 16
    key = jax.random.PRNGKey(0)
    ks = jax.random.split(key, 11)

    x = jax.random.normal(ks[0], (B, L), jnp.float32)
    w1 = 0.3 * jax.random.normal(ks[1], (E, 1, 3), jnp.float32)
    b1 = 0.1 * jax.random.normal(ks[2], (E,), jnp.float32)
    w_in = 0.2 * jax.random.normal(ks[3], (3 * E, E), jnp.float32)
    b_in = 0.05 * jax.random.normal(ks[4], (3 * E,), jnp.float32)
    w_out = 0.2 * jax.random.normal(ks[5], (E, E), jnp.float32)
    b_out = 0.05 * jax.random.normal(ks[6], (E,), jnp.float32)
    wfc1 = 0.2 * jax.random.normal(ks[7], (H, E), jnp.float32)
    bfc1 = 0.1 * jax.random.normal(ks[8], (H,), jnp.float32)
    wfc2 = 0.2 * jax.random.normal(ks[9], (O, H), jnp.float32)
    bfc2 = 0.1 * jax.random.normal(ks[10], (O,), jnp.float32)
    params = (w1, b1, w_in, b_in, w_out, b_out, wfc1, bfc1, wfc2, bfc2)

    packed, out_size = pack_params(params)          # one-time repack (off hot path)
    packed = jax.block_until_ready(packed)

    out = jax.block_until_ready(cnnmha_forward(x, packed, out_size))
    ref = torch_reference(x, params)

    assert out.shape == (B, O)
    np.testing.assert_allclose(np.asarray(out), np.asarray(ref),
                               rtol=1e-4, atol=1e-4)
    print("KERNEL_OK")
</pallas_src>

<mosaic_0001>
module attributes {stable_mosaic.version = 11 : i64} {
  func.func @cnnmha_kernel(%arg0: memref<32x3xf32, #tpu.memory_space<vmem>>, %arg1: memref<3x16xf32, #tpu.memory_space<vmem>>, %arg2: memref<1x16xf32, #tpu.memory_space<vmem>>, %arg3: memref<16x48xf32, #tpu.memory_space<vmem>>, %arg4: memref<1x48xf32, #tpu.memory_space<vmem>>, %arg5: memref<16x4xf32, #tpu.memory_space<vmem>>, %arg6: memref<4x16xf32, #tpu.memory_space<vmem>>, %arg7: memref<16x32xf32, #tpu.memory_space<vmem>>, %arg8: memref<1x32xf32, #tpu.memory_space<vmem>>, %arg9: memref<32x128xf32, #tpu.memory_space<vmem>>, %arg10: memref<1x128xf32, #tpu.memory_space<vmem>>, %arg11: memref<2x128xf32, #tpu.memory_space<vmem>>) attributes {dimension_semantics = [], scalar_prefetch = 0 : i64, scratch_operands = 0 : i64, tpu.core_type = #tpu.core_type<tc>} {
    %c0 = arith.constant 0 : index
    %c0_0 = arith.constant 0 : index
    %0 = vector.load %arg0[%c0, %c0_0] : memref<32x3xf32, #tpu.memory_space<vmem>>, vector<32x3xf32>
    %c0_1 = arith.constant 0 : index
    %c0_2 = arith.constant 0 : index
    %1 = vector.load %arg1[%c0_1, %c0_2] : memref<3x16xf32, #tpu.memory_space<vmem>>, vector<3x16xf32>
    %cst = arith.constant dense<0.000000e+00> : vector<32x16xf32>
    %2 = tpu.matmul %0, %1, %cst {dimension_numbers = #tpu.dot_dimension_numbers<[1], [0], [0], [1], [0, 0, 1, 1], [], []>} : vector<32x3xf32>, vector<3x16xf32>, vector<32x16xf32> -> vector<32x16xf32>
    %c0_3 = arith.constant 0 : index
    %c0_4 = arith.constant 0 : index
    %3 = vector.load %arg2[%c0_3, %c0_4] : memref<1x16xf32, #tpu.memory_space<vmem>>, vector<1x16xf32>
    %4 = vector.broadcast %3 : vector<1x16xf32> to vector<32x16xf32>
    %5 = arith.addf %2, %4 : vector<32x16xf32>
    %cst_5 = arith.constant 0.000000e+00 : f32
    %6 = vector.broadcast %cst_5 : f32 to vector<32x16xf32>
    %7 = arith.maximumf %5, %6 : vector<32x16xf32>
    %c0_6 = arith.constant 0 : index
    %c0_7 = arith.constant 0 : index
    %8 = vector.load %arg3[%c0_6, %c0_7] : memref<16x48xf32, #tpu.memory_space<vmem>>, vector<16x48xf32>
    %cst_8 = arith.constant dense<0.000000e+00> : vector<32x48xf32>
    %9 = tpu.matmul %7, %8, %cst_8 {dimension_numbers = #tpu.dot_dimension_numbers<[1], [0], [0], [1], [0, 0, 1, 1], [], []>} : vector<32x16xf32>, vector<16x48xf32>, vector<32x48xf32> -> vector<32x48xf32>
    %c0_9 = arith.constant 0 : index
    %c0_10 = arith.constant 0 : index
    %10 = vector.load %arg4[%c0_9, %c0_10] : memref<1x48xf32, #tpu.memory_space<vmem>>, vector<1x48xf32>
    %11 = vector.broadcast %10 : vector<1x48xf32> to vector<32x48xf32>
    %12 = arith.addf %9, %11 : vector<32x48xf32>
    %13 = vector.shape_cast %12 : vector<32x48xf32> to vector<2x16x48xf32>
    %14 = vector.extract_strided_slice %13 {offsets = [0, 15, 0], sizes = [2, 1, 16], strides = [1, 1, 1]} : vector<2x16x48xf32> to vector<2x1x16xf32>
    %15 = vector.shape_cast %14 : vector<2x1x16xf32> to vector<2x16xf32>
    %16 = vector.extract_strided_slice %13 {offsets = [0, 0, 16], sizes = [2, 16, 16], strides = [1, 1, 1]} : vector<2x16x48xf32> to vector<2x16x16xf32>
    %17 = vector.extract_strided_slice %13 {offsets = [0, 0, 32], sizes = [2, 16, 16], strides = [1, 1, 1]} : vector<2x16x48xf32> to vector<2x16x16xf32>
    %18 = vector.shape_cast %15 : vector<2x16xf32> to vector<2x1x16xf32>
    %19 = vector.broadcast %18 : vector<2x1x16xf32> to vector<2x16x16xf32>
    %20 = arith.mulf %19, %16 : vector<2x16x16xf32>
    %21 = vector.shape_cast %20 : vector<2x16x16xf32> to vector<32x16xf32>
    %c0_11 = arith.constant 0 : index
    %c0_12 = arith.constant 0 : index
    %22 = vector.load %arg5[%c0_11, %c0_12] : memref<16x4xf32, #tpu.memory_space<vmem>>, vector<16x4xf32>
    %cst_13 = arith.constant dense<0.000000e+00> : vector<32x4xf32>
    %23 = tpu.matmul %21, %22, %cst_13 {dimension_numbers = #tpu.dot_dimension_numbers<[1], [0], [0], [1], [0, 0, 1, 1], [], []>} : vector<32x16xf32>, vector<16x4xf32>, vector<32x4xf32> -> vector<32x4xf32>
    %24 = vector.shape_cast %23 : vector<32x4xf32> to vector<2x16x4xf32>
    %cst_14 = arith.constant dense<0xFF800000> : vector<2x4xf32>
    %25 = vector.multi_reduction <maximumf>, %24, %cst_14 [1] : vector<2x16x4xf32> to vector<2x4xf32>
    %26 = vector.shape_cast %25 : vector<2x4xf32> to vector<2x1x4xf32>
    %27 = vector.broadcast %26 : vector<2x1x4xf32> to vector<2x16x4xf32>
    %28 = arith.subf %24, %27 : vector<2x16x4xf32>
    %29 = math.exp %28 : vector<2x16x4xf32>
    %cst_15 = arith.constant dense<0.000000e+00> : vector<2x4xf32>
    %30 = vector.multi_reduction <add>, %29, %cst_15 [1] : vector<2x16x4xf32> to vector<2x4xf32>
    %31 = vector.shape_cast %30 : vector<2x4xf32> to vector<2x1x4xf32>
    %32 = tpu.reciprocal %31 : vector<2x1x4xf32> -> vector<2x1x4xf32>
    %33 = vector.broadcast %32 : vector<2x1x4xf32> to vector<2x16x4xf32>
    %34 = arith.mulf %29, %33 : vector<2x16x4xf32>
    %35 = vector.shape_cast %34 : vector<2x16x4xf32> to vector<32x4xf32>
    %c0_16 = arith.constant 0 : index
    %c0_17 = arith.constant 0 : index
    %36 = vector.load %arg6[%c0_16, %c0_17] : memref<4x16xf32, #tpu.memory_space<vmem>>, vector<4x16xf32>
    %cst_18 = arith.constant dense<0.000000e+00> : vector<32x16xf32>
    %37 = tpu.matmul %35, %36, %cst_18 {dimension_numbers = #tpu.dot_dimension_numbers<[1], [0], [0], [1], [0, 0, 1, 1], [], []>} : vector<32x4xf32>, vector<4x16xf32>, vector<32x16xf32> -> vector<32x16xf32>
    %38 = vector.shape_cast %37 : vector<32x16xf32> to vector<2x16x16xf32>
    %39 = arith.mulf %38, %17 : vector<2x16x16xf32>
    %cst_19 = arith.constant dense<0.000000e+00> : vector<2x16xf32>
    %40 = vector.multi_reduction <add>, %39, %cst_19 [1] : vector<2x16x16xf32> to vector<2x16xf32>
    %c0_20 = arith.constant 0 : index
    %c0_21 = arith.constant 0 : index
    %41 = vector.load %arg7[%c0_20, %c0_21] : memref<16x32xf32, #tpu.memory_space<vmem>>, vector<16x32xf32>
    %cst_22 = arith.constant dense<0.000000e+00> : vector<2x32xf32>
    %42 = tpu.matmul %40, %41, %cst_22 {dimension_numbers = #tpu.dot_dimension_numbers<[1], [0], [0], [1], [0, 0, 1, 1], [], []>} : vector<2x16xf32>, vector<16x32xf32>, vector<2x32xf32> -> vector<2x32xf32>
    %c0_23 = arith.constant 0 : index
    %c0_24 = arith.constant 0 : index
    %43 = vector.load %arg8[%c0_23, %c0_24] : memref<1x32xf32, #tpu.memory_space<vmem>>, vector<1x32xf32>
    %44 = vector.broadcast %43 : vector<1x32xf32> to vector<2x32xf32>
    %45 = arith.addf %42, %44 : vector<2x32xf32>
    %cst_25 = arith.constant 0.000000e+00 : f32
    %46 = vector.broadcast %cst_25 : f32 to vector<2x32xf32>
    %47 = arith.maximumf %45, %46 : vector<2x32xf32>
    %c0_26 = arith.constant 0 : index
    %c0_27 = arith.constant 0 : index
    %48 = vector.load %arg9[%c0_26, %c0_27] : memref<32x128xf32, #tpu.memory_space<vmem>>, vector<32x128xf32>
    %cst_28 = arith.constant dense<0.000000e+00> : vector<2x128xf32>
    %49 = tpu.matmul %47, %48, %cst_28 {dimension_numbers = #tpu.dot_dimension_numbers<[1], [0], [0], [1], [0, 0, 1, 1], [], []>} : vector<2x32xf32>, vector<32x128xf32>, vector<2x128xf32> -> vector<2x128xf32>
    %c0_29 = arith.constant 0 : index
    %c0_30 = arith.constant 0 : index
    %50 = vector.load %arg10[%c0_29, %c0_30] : memref<1x128xf32, #tpu.memory_space<vmem>>, vector<1x128xf32>
    %51 = vector.broadcast %50 : vector<1x128xf32> to vector<2x128xf32>
    %52 = arith.addf %49, %51 : vector<2x128xf32>
    %c0_31 = arith.constant 0 : index
    %c0_32 = arith.constant 0 : index
    %53 = vector.load %arg11[%c0_31, %c0_32] : memref<2x128xf32, #tpu.memory_space<vmem>>, vector<2x128xf32>
    tpu.vector_store %arg11[%c0_31, %c0_32], %52 {strides = array<i32>} : memref<2x128xf32, #tpu.memory_space<vmem>>, vector<2x128xf32>,
    return
  }
}

</mosaic_0001>

<bundles_post_ra>
// kernel: cnnmha_forward.1
= control target key start
LH: loop header
LB: loop body
LE: loop exit
PB: predicated region body
PF: predicated region fallthrough
CT: control target
= control target key end

     0   :  { %vm64_vm0 = vcmask 1042432   ;;  %vm51_vm1 = vcmask 23552   ;;  %s1098_s0 = inlined_call_operand.vmem [shape: f32[32,3], index: 0, kind: input, shape index: {}]   ;;  %s1099_s1 = inlined_call_operand.vmem [shape: f32[3,16], index: 1, kind: input, shape index: {}]   ;;  %s1100_s2 = inlined_call_operand.vmem [shape: f32[1,16], index: 2, kind: input, shape index: {}]   ;;  %s1101_s3 = inlined_call_operand.vmem [shape: f32[16,48], index: 3, kind: input, shape index: {}]   ;;  %s1102_s4 = inlined_call_operand.vmem [shape: f32[1,48], index: 4, kind: input, shape index: {}]   ;;  %s1103_s5 = inlined_call_operand.vmem [shape: f32[16,4], index: 5, kind: input, shape index: {}]   ;;  %s1104_s6 = inlined_call_operand.vmem [shape: f32[4,16], index: 6, kind: input, shape index: {}]   ;;  %s1105_s7 = inlined_call_operand.vmem [shape: f32[16,32], index: 7, kind: input, shape index: {}]   ;;  %s1106_s8 = inlined_call_operand.vmem [shape: f32[1,32], index: 8, kind: input, shape index: {}]   ;;  %s1107_s9 = inlined_call_operand.vmem [shape: f32[32,128], index: 9, kind: input, shape index: {}]   ;;  %s1108_s10 = inlined_call_operand.vmem [shape: f32[1,128], index: 10, kind: input, shape index: {}]   ;;  %s1109_s11 = inlined_call_operand.hbm [shape: f32[2,128], index: 11, kind: output, shape index: {}]  }
   0x1   :  { %v43_v0 = vld [vmem:[%s1099_s1] sm:$0x7]  ;;  %v40_v2 = vld [vmem:[%s1098_s0 + $0x8] sm:$0xff]  ;;  %v41_v3 = vld [vmem:[%s1098_s0 + $0x10] sm:$0xff] }
   0x2   :  { %v39_v1 = vld [vmem:[%s1098_s0] sm:$0xff]  ;;  %822 = vmatprep.subr.msk.mxu0 %vm64_vm0, %v43_v0 }
   0x3   :  { %824 = vmatprep.mubr.msk.f32.mxu0 %vm51_vm1, %v39_v1 }
   0x4   :  { %16 = vsyncpa [#allocation3], 0  ;;  %823 = vmatpush3.msk.msra.mxu0 %vm64_vm0, %v43_v0  ;;  %v42_v4 = vld [vmem:[%s1098_s0 + $0x18] sm:$0xff]  ;;  %v157_v5 = vld [vmem:[%s1101_s3] sm:$0xff]  ;;  %vm166_vm2 = vcmask 130048   ;;  %s935_s16 = smov 112   ;;  %v264_v33 = vlaneseq }
   0x5   :  { %825 = vmatmul.mubr.msk.f32.vlgmr.msra.gmra.mrb[0].mxu0 %vm51_vm1, %v40_v2  ;;  %v158_v6 = vld [vmem:[%s1101_s3 + $0x8] sm:$0xff]  ;;  %v768_v8 = vld [vmem:[%s1100_s2] ss:$0 sm:$0xff]  ;;  %vm459_vm3 = vcmask 1043456   ;;  %vm391_vm4 = vcmask 31744   ;;  %vm938_vm5 = vmmov 0  }
   0x6   :  { %827 = vmatprep.mubr.msk.f32.mxu0 %vm51_vm1, %v41_v3  ;;  %v876_v7 = vpack.c.bf16 %v158_v6, %v157_v5  ;;  %v292_v21 = vld [vmem:[%s1103_s5] sm:$0xff]  ;;  %v293_v22 = vld [vmem:[%s1103_s5 + $0x8] sm:$0xff]  ;;  %s936_s5 = smov 96   ;;  %v265_v34 = vshrl.u32 %v264_v33, 7  ;;  %vm593_vm6 = vcmask 1041409   ;;  %vm679_vm7 = vcmask 261120  }
   0x7   :  { %v880_v23 = vpack.c.bf16 %v293_v22, %v292_v21  ;;  %v774_v24 = vld [vmem:[%s1102_s4] ss:$0 sm:$0xff]  ;;  %s940_s12 = smov [#allocation2]  }
   0x8   :  { %877 = vmatprep.subr.bf16.mxu1 %v876_v7  ;;  %v266_v35 = vsub.s32 7, %v265_v34  ;;  %v446_v46 = vld [vmem:[%s1104_s6] sm:$0xf]  ;;  %s760_s0 = sshll.u32 %s940_s12, 4  ;;  %s761_s0 = int_to_ptr.vmem [resolvable:$true] %s760_s0 }
   0x9   :  { %828 = vmatmul.mubr.msk.f32.gmra.mrb[2].mxu0 %vm51_vm1, %v42_v4  ;;  %879 = vmatpush3.bf16.msra.mxu1 %v876_v7  ;;  %p916_p1 = scmp.lt.s32.totalorder %s761_s0, %s761_s0 }
   0xa   :  { %881 = vmatprep.subr.bf16.mxu0 %v880_v23  ;;  %850 = vmatprep.subr.msk.mxu1 %vm459_vm3, %v446_v46 }
   0xb   :  { %883 = vmatpush3.bf16.msra.mxu0 %v880_v23 }
  0xd8   :  { %v826_v9 = vpop.f32.mrb[0].mxu0 }
  0xd9   :  { %v140_v10 = vadd.f32 %v826_v9, %v768_v8  ;;  %v134_v11 = vpop.f32.mrb[1].mxu0 }
  0xda   :  { %v135_v12 = vadd.f32 %v768_v8, %v134_v11 }
  0xdb   :  { %v154_v15 = vmax.f32 %v140_v10, 0.0 }
  0xdc   :  { %v153_v13 = vmax.f32 %v135_v12, 0.0  ;;  %v829_v14 = vpop.f32.mrb[2].mxu0 }
  0xdd   :  { %v150_v16 = vadd.f32 %v829_v14, %v768_v8  ;;  %v144_v17 = vpop.f32.mrb[3].mxu0 }
  0xde   :  { %v145_v18 = vadd.f32 %v768_v8, %v144_v17  ;;  %834 = vmatprep.mubr.msk.f32.mxu1 %vm166_vm2, %v153_v13 }
  0xdf   :  { %835 = vmatmul.mubr.msk.f32.vlgmr.msra.gmra.mrb[0].mxu1 %vm166_vm2, %v154_v15  ;;  %v156_v20 = vmax.f32 %v150_v16, 0.0 }
  0xe0   :  { %v155_v19 = vmax.f32 %v145_v18, 0.0  ;;  %851 = vmatpush3.msk.msra.mxu1 %vm459_vm3, %v446_v46  ;;  %v668_v46 = vld [vmem:[%s1107_s9] sm:$0xff] }
  0xe2   :  { %837 = vmatprep.mubr.msk.f32.mxu1 %vm166_vm2, %v155_v19 }
  0xe3   :  { %838 = vmatmul.mubr.msk.f32.gmra.mrb[2].mxu1 %vm166_vm2, %v156_v20 }
 0x1b2   :  { %v836_v25 = vpop.f32.mrb[0].mxu1 }
 0x1b3   :  { %v245_v26 = vpop.f32.mrb[1].mxu1  ;;  %v251_v30 = vadd.f32 %v836_v25, %v774_v24 }
 0x1b4   :  { %v246_v27 = vadd.f32 %v774_v24, %v245_v26 }
 0x1b5   :  { %v267_v36 = vrot.slane %v251_v30, %v266_v35 }
 0x1b6   :  { %v839_v28 = vpop.f32.mrb[2].mxu1  ;;  %276 = vrot.lane.b32.xlu0 %v246_v27, %s935_s16 }
 0x1b7   :  { %v255_v29 = vpop.f32.mrb[3].mxu1  ;;  %v261_v32 = vadd.f32 %v839_v28, %v774_v24 }
 0x1b8   :  { %v256_v31 = vadd.f32 %v774_v24, %v255_v29 }
 0x1b9   :  { %v271_v39 = vrot.slane %v261_v32, %v266_v35 }
 0x1ba   :  { %280 = vrot.lane.b32.xlu1 %v256_v31, %s935_s16  ;;  %278 = vrot.lane.b32.xlu0 %v251_v30, %s935_s16 }
 0x1be   :  { %282 = vrot.lane.b32.xlu1 %v261_v32, %s935_s16  ;;  %548 = vrot.lane.b32.xlu0 %v246_v27, %s936_s5 }
 0x1c2   :  { %550 = vrot.lane.b32.xlu1 %v251_v30, %s936_s5  ;;  %552 = vrot.lane.b32.xlu0 %v256_v31, %s936_s5 }
 0x1c6   :  { %554 = vrot.lane.b32.xlu1 %v261_v32, %s936_s5 }
 0x228   :  { %v277_v37 = vpop.permute.xlu0 %276 }
 0x229   :  { %v288_v38 = vmul.f32 %v277_v37, %v267_v36 }
 0x22b   :  { %844 = vmatprep.mubr.msk.f32.mxu0 %vm166_vm2, %v288_v38 }
 0x22c   :  { %v281_v40 = vpop.permute.xlu1 %280  ;;  %v279_v41 = vpop.permute.xlu0 %278 }
 0x22d   :  { %v290_v42 = vmul.f32 %v281_v40, %v271_v39  ;;  %v289_v43 = vmul.f32 %v279_v41, %v267_v36  ;;  %v582_v41 = vld [vmem:[%s1105_s7] sm:$0xff] }
 0x22f   :  { %845 = vmatmul.mubr.msk.f32.vlgmr.msra.gmra.mrb[4].mxu0 %vm166_vm2, %v289_v43 }
 0x230   :  { %v283_v44 = vpop.permute.xlu1 %282  ;;  %847 = vmatprep.mubr.msk.f32.mxu0 %vm166_vm2, %v290_v42  ;;  %v583_v42 = vld [vmem:[%s1105_s7 + $0x8] sm:$0xff] }
 0x231   :  { %v291_v45 = vmul.f32 %v283_v44, %v271_v39  ;;  %v885_v43 = vpack.c.bf16 %v583_v42, %v582_v41  ;;  %v937_v44 = vmov 0.0|0.0  }
 0x232   :  { %884 = vmatprep.subr.bf16.mxu0 %v937_v44  ;;  %887 = vmatprep.subr.bf16.mxu1 %v937_v44 }
 0x233   :  { %848 = vmatmul.mubr.msk.f32.gmra.mrb[6].mxu0 %vm166_vm2, %v291_v45  ;;  %v939_v45 = vmov 0.0  }
 0x234   :  { %886 = vmatpush3.bf16.msra.mxu0 %v885_v43  ;;  %862 = vmatprep.mubr.msk.f32.mxu0 %vm938_vm5, %v939_v45 }
 0x302   :  { %v846_v47 = vpop.f32.mrb[4].mxu0 }
 0x303   :  { %v393_v48 = vsel %vm391_vm4, %v846_v47, -inf  ;;  %v372_v49 = vpop.f32.mrb[5].mxu0 }
 0x304   :  { %v392_v50 = vsel %vm391_vm4, %v372_v49, -inf }
 0x305   :  { %v394_v51 = vmax.f32 %v392_v50, %v393_v48  ;;  %v549_v50 = vpop.permute.xlu0 %548 }
 0x306   :  { %v849_v52 = vpop.f32.mrb[6].mxu0 }
 0x307   :  { %v395_v53 = vrot.slane %v394_v51, 4  ;;  %v402_v54 = vsel %vm391_vm4, %v849_v52, -inf  ;;  %v382_v55 = vpop.f32.mrb[7].mxu0 }
 0x308   :  { %v401_v56 = vsel %vm391_vm4, %v382_v55, -inf }
 0x309   :  { %v396_v57 = vmax.f32 %v394_v51, %v395_v53  ;;  %v403_v58 = vmax.f32 %v401_v56, %v402_v54 }
 0x30b   :  { %v397_v59 = vrot.slane %v396_v57, 2  ;;  %v404_v60 = vrot.slane %v403_v58, 4 }
 0x30d   :  { %v398_v61 = vmax.f32 %v396_v57, %v397_v59  ;;  %v405_v62 = vmax.f32 %v403_v58, %v404_v60  ;;  %v553_v59 = vpop.permute.xlu0 %552 }
 0x30f   :  { %v399_v63 = vrot.slane %v398_v61, 1  ;;  %v406_v0 = vrot.slane %v405_v62, 2 }
 0x311   :  { %v400_v1 = vmax.f32 %v398_v61, %v399_v63  ;;  %v407_v2 = vmax.f32 %v405_v62, %v406_v0 }
 0x313   :  { %v410_v3 = vsub.f32 %v372_v49, %v400_v1  ;;  %v411_v4 = vsub.f32 %v846_v47, %v400_v1  ;;  %v408_v5 = vrot.slane %v407_v2, 1  ;;  %v669_v47 = vld [vmem:[%s1107_s9 + $0x8] sm:$0xff]  ;;  %v551_v49 = vpop.permute.xlu1 %550 }
 0x314   :  { %v888_v48 = vpack.c.bf16 %v669_v47, %v668_v46 }
 0x315   :  { %v414_v6 = vmul.f32 1.442695, %v410_v3  ;;  %v416_v7 = vmul.f32 1.442695, %v411_v4  ;;  %v409_v8 = vmax.f32 %v407_v2, %v408_v5 }
 0x317   :  { %899 = vpow2.f32 %v414_v6  ;;  %v412_v9 = vsub.f32 %v382_v55, %v409_v8  ;;  %v413_v10 = vsub.f32 %v849_v52, %v409_v8  ;;  %v555_v56 = vpop.permute.xlu1 %554 }
 0x318   :  { %901 = vpow2.f32 %v416_v7 }
 0x319   :  { %v418_v11 = vmul.f32 1.442695, %v412_v9  ;;  %v420_v12 = vmul.f32 1.442695, %v413_v10 }
 0x31b   :  { %903 = vpow2.f32 %v418_v11 }
 0x31c   :  { %905 = vpow2.f32 %v420_v12 }
 0x321   :  { %v900_v13 = vpop.eup %899 }
 0x322   :  { %v902_v14 = vpop.eup %901  ;;  %v422_v15 = vsel %vm391_vm4, %v900_v13, 0.0 }
 0x323   :  { %v423_v16 = vsel %vm391_vm4, %v902_v14, 0.0 }
 0x324   :  { %v424_v17 = vadd.f32 %v423_v16, %v422_v15  ;;  %v670_v16 = vld [vmem:[%s1107_s9 + $0x10] sm:$0xff] }
 0x325   :  { %v904_v18 = vpop.eup %903 }
 0x326   :  { %v906_v19 = vpop.eup %905  ;;  %v425_v20 = vrot.slane %v424_v17, 4  ;;  %v431_v21 = vsel %vm391_vm4, %v904_v18, 0.0 }
 0x327   :  { %v432_v22 = vsel %vm391_vm4, %v906_v19, 0.0 }
 0x328   :  { %v426_v23 = vadd.f32 %v425_v20, %v424_v17  ;;  %v433_v24 = vadd.f32 %v432_v22, %v431_v21  ;;  %v671_v17 = vld [vmem:[%s1107_s9 + $0x18] sm:$0xff]  ;;  %s911_s9 = scalar_lea.vmem %s761_s0, 32 }
 0x329   :  { %p912_p0 = scmp.ne.s32.totalorder %s761_s0, %s911_s9  ;;  %p917_p2 = scmp.lt.s32.totalorder %s911_s9, %s911_s9 }
 0x32a   :  { %v427_v25 = vrot.slane %v426_v23, 2  ;;  %v434_v26 = vrot.slane %v433_v24, 4 }
 0x32b   :  { %p918_p3 = por %p917_p2, %p916_p1 }
 0x32c   :  { %v428_v27 = vadd.f32 %v427_v25, %v426_v23  ;;  %v435_v28 = vadd.f32 %v434_v26, %v433_v24  ;;  %v790_v24 = vld [vmem:[%s1108_s10] ss:$0 sm:$0xff] }
 0x32d   :  { %p919_p4 = pnand %p918_p3, %p912_p0 }
 0x32e   :  { %v429_v29 = vrot.slane %v428_v27, 1  ;;  %v436_v30 = vrot.slane %v435_v28, 2 }
 0x330   :  { %v437_v31 = vadd.f32 %v436_v30, %v435_v28  ;;  %v430_v32 = vadd.f32 %v429_v29, %v428_v27 }
 0x332   :  { %v438_v33 = vrot.slane %v437_v31, 1  ;;  %907 = vrcp.f32 %v430_v32 }
 0x334   :  { %v439_v34 = vadd.f32 %v438_v33, %v437_v31 }
 0x336   :  { %909 = vrcp.f32 %v439_v34 }
 0x33c   :  { %v908_v35 = vpop.eup %907 }
 0x33d   :  { %v442_v36 = vmul.f32 %v908_v35, %v900_v13  ;;  %v443_v37 = vmul.f32 %v908_v35, %v902_v14 }
 0x33f   :  { %852 = vmatprep.mubr.msk.f32.mxu1 %vm391_vm4, %v442_v36 }
 0x340   :  { %v910_v38 = vpop.eup %909  ;;  %853 = vmatmul.mubr.msk.f32.vlgmr.msra.gmra.mrb[4].mxu1 %vm391_vm4, %v443_v37 }
 0x341   :  { %v444_v39 = vmul.f32 %v910_v38, %v904_v18  ;;  %v445_v40 = vmul.f32 %v910_v38, %v906_v19  ;;  %889 = vmatpush3.bf16.msra.mxu1 %v888_v48  ;;  %v891_v18 = vpack.c.bf16 %v671_v17, %v670_v16  ;;  %v788_v19 = vld [vmem:[%s1106_s8] ss:$0 sm:$0xff] }
 0x342   :  { %890 = vmatprep.subr.bf16.mxu1 %v937_v44 }
 0x343   :  { %855 = vmatprep.mubr.msk.f32.mxu1 %vm391_vm4, %v444_v39 }
 0x344   :  { %856 = vmatmul.mubr.msk.f32.gmra.mrb[6].mxu1 %vm391_vm4, %v445_v40 }
 0x345   :  { %873 = vmatprep.mubr.msk.f32.mxu1 %vm938_vm5, %v939_v45  ;;  %892 = vmatpush3.bf16.msra.mxu1 %v891_v18 }
 0x413   :  { %v854_v51 = vpop.f32.mrb[4].mxu1 }
 0x414   :  { %v561_v52 = vmul.f32 %v854_v51, %v551_v49  ;;  %v529_v53 = vpop.f32.mrb[5].mxu1 }
 0x415   :  { %v560_v54 = vmul.f32 %v549_v50, %v529_v53 }
 0x416   :  { %v565_v55 = vsel %vm166_vm2, %v561_v52, 0.0 }
 0x417   :  { %v564_v57 = vsel %vm166_vm2, %v560_v54, 0.0  ;;  %v857_v58 = vpop.f32.mrb[6].mxu1 }
 0x418   :  { %v566_v60 = vadd.f32 %v565_v55, %v564_v57  ;;  %v563_v61 = vmul.f32 %v857_v58, %v555_v56  ;;  %v539_v62 = vpop.f32.mrb[7].mxu1 }
 0x419   :  { %v562_v63 = vmul.f32 %v553_v59, %v539_v62 }
 0x41a   :  { %v567_v0 = vrot.slane %v566_v60, 4  ;;  %v574_v1 = vsel %vm166_vm2, %v563_v61, 0.0 }
 0x41b   :  { %v573_v2 = vsel %vm166_vm2, %v562_v63, 0.0 }
 0x41c   :  { %v568_v3 = vadd.f32 %v567_v0, %v566_v60  ;;  %v575_v4 = vadd.f32 %v574_v1, %v573_v2 }
 0x41e   :  { %v569_v5 = vrot.slane %v568_v3, 2  ;;  %v576_v6 = vrot.slane %v575_v4, 4 }
 0x420   :  { %v570_v7 = vadd.f32 %v569_v5, %v568_v3  ;;  %v577_v8 = vadd.f32 %v576_v6, %v575_v4 }
 0x422   :  { %v578_v9 = vrot.slane %v577_v8, 2  ;;  %v571_v10 = vrot.slane %v570_v7, 1 }
 0x424   :  { %v579_v11 = vadd.f32 %v578_v9, %v577_v8  ;;  %v572_v13 = vadd.f32 %v571_v10, %v570_v7 }
 0x426   :  { %v580_v12 = vrot.slane %v579_v11, 1 }
 0x428   :  { %v581_v14 = vadd.f32 %v580_v12, %v579_v11 }
 0x42a   :  { %v594_v15 = vsel %vm593_vm6, %v581_v14, %v572_v13 }
 0x42b   :  { %863 = vmatmul.mubr.msk.f32.vlgmr.msra.gmra.mrb[8].mxu0 %vm166_vm2, %v594_v15 }
 0x4fe   :  { %v663_v20 = vpop.f32.mrb[8].mxu0 }
 0x4ff   :  { %v664_v21 = vadd.f32 %v788_v19, %v663_v20  ;;  %v864_v22 = vpop.f32.mrb[9].mxu0 }
 0x501   :  { %v667_v23 = vmax.f32 %v664_v21, 0.0 }
 0x503   :  { %874 = vmatmul.mubr.msk.f32.vlgmr.msra.gmra.mrb[8].mxu1 %vm679_vm7, %v667_v23 }
 0x5d6   :  { %v749_v25 = vpop.f32.mrb[8].mxu1 }
 0x5d7   :  { %v750_v26 = vadd.f32 %v790_v24, %v749_v25  ;;  %v875_v27 = vpop.f32.mrb[9].mxu1 }
 0x5d9   :  { %753 = vst [vmem:[#allocation2] sm:$0x3] %v750_v26 }
 0x5da   :  { %922 = shalt.err (!%p919_p4)
}
 0x5db   :  { %s923_s3 = scalar_lea.hbm %s1109_s11, 32 }
 0x5dc   :  { %p924_p5 = scmp.ne.s32.totalorder %s1109_s11, %s923_s3  ;;  %p927_p6 = scmp.lt.u32.totalorder %s923_s3, %s1109_s11 }
 0x5de   :  { %p929_p7 = pnand %p927_p6, %p924_p5 }
 0x5e0   :  { %932 = shalt.err (!%p929_p7)
}
 0x5e1   :  { %763 = dma.vmem_to_hbm [thread:$0]  %s761_s0, 32, %s1109_s11, [#allocation3]  }
 0x5e2   :  { %933 = dma.done.wait [#allocation3], 32  }
 0x5e3   :  { %934 = vsyncadd [#allocation3], 4294967264 }
 0x5e4   :  { %767 = vsyncpa [#allocation3], 1 }

</bundles_post_ra>
